<compile_context>
chip_gen: v6e
topology: v6e:2x2x1
jax: 0.10.0
libtpu: 0.0.40
codegen_flags: <defaults>
</compile_context>

<pallas_src>
import jax
import jax.numpy as jnp
from jax.experimental import pallas as pl
from jax.experimental.pallas import tpu as pltpu

N_CLASSES = 4      # output classes
FC_INPUT = 32      # per-instance feature dim
E_DIM = 128        # hidden_space_len (E == L)
D_DIM = E_DIM // 2 # attention hidden dim
N_INST = 8         # instances per bag
N_BAGS = 2         # bags processed per call


def attention_mil_kernel(feats_ref, w_emb_ref, b_emb_ref,
                         w_a1_ref, b_a1_ref, w_a2_ref, b_a2_ref,
                         w_after_ref, b_after_ref, w_cls_ref, b_cls_ref,
                         out_ref):
    bb, n, f = feats_ref.shape
    e = w_emb_ref.shape[1]

    # Flatten bags so every Linear is a single MXU matmul over bb*n rows.
    x = feats_ref[...].reshape(bb * n, f)                                      # (bb*n, F)

    # embedding + ReLU  -> features_to_return
    h = jnp.dot(x, w_emb_ref[...], preferred_element_type=jnp.float32) + b_emb_ref[...]
    h = jnp.maximum(h, 0.0)                                                    # (bb*n, E)

    # attention MLP: Linear(E, D) -> tanh -> Linear(D, 1)
    a = jnp.tanh(jnp.dot(h, w_a1_ref[...],
                         preferred_element_type=jnp.float32) + b_a1_ref[...])  # (bb*n, D)
    a = jnp.dot(a, w_a2_ref[...],
                preferred_element_type=jnp.float32) + b_a2_ref[...]            # (bb*n, 1)

    # Per-bag softmax over the N instances (sublane reductions, EUP reciprocal).
    s = a.reshape(bb, n, 1)
    s = s - jnp.max(s, axis=1, keepdims=True)
    p = jnp.exp(s)
    w = p * pl.reciprocal(jnp.sum(p, axis=1, keepdims=True), approx=False)     # (bb, N, 1)

    # Attention pooling M[b] = sum_n w[b,n] * h[b,n,:]  (VPU multiply + sublane reduce).
    m = jnp.sum(w * h.reshape(bb, n, e), axis=1)                               # (bb, E)

    # embedding_after_attention + ReLU
    m = jnp.dot(m, w_after_ref[...],
                preferred_element_type=jnp.float32) + b_after_ref[...]
    m = jnp.maximum(m, 0.0)                                                    # (bb, E)

    # classifier  (== logits.view(-1) per bag)
    out_ref[...] = jnp.dot(m, w_cls_ref[...],
                           preferred_element_type=jnp.float32) + b_cls_ref[...]  # (bb, C)


def attention_mil_forward(feats, params, bags_per_block=None):
    """feats: (B, N, F) batch of bags -> (B, C) per-bag logits."""
    (w_emb, b_emb, w_a1, b_a1, w_a2, b_a2,
     w_after, b_after, w_cls, b_cls) = params
    B, N, F = feats.shape
    C = w_cls.shape[1]

    BB = B if bags_per_block is None else bags_per_block
    assert B % BB == 0, "batch must divide evenly into bag blocks"
    assert BB == B or BB % 8 == 0, "partial bag blocks must be sublane-aligned"

    def resident(arr):
        # Full-array block with a constant index_map -> weight stays VMEM-resident
        # across all grid steps (no re-DMA).
        nd = arr.ndim
        return pl.BlockSpec(arr.shape, lambda b, _nd=nd: (0,) * _nd)

    out = pl.pallas_call(
        attention_mil_kernel,
        out_shape=jax.ShapeDtypeStruct((B, C), jnp.float32),
        grid=(B // BB,),
        in_specs=[
            pl.BlockSpec((BB, N, F), lambda b: (b, 0, 0)),
            resident(w_emb), resident(b_emb),
            resident(w_a1), resident(b_a1),
            resident(w_a2), resident(b_a2),
            resident(w_after), resident(b_after),
            resident(w_cls), resident(b_cls),
        ],
        out_specs=pl.BlockSpec((BB, C), lambda b: (b, 0)),
        compiler_params=pltpu.CompilerParams(
            dimension_semantics=("parallel",)),   # shards bag blocks across TCs on v7x
    )(feats, *params)
    return out


def reference_forward(feats, params):
    # Pure-JAX reference mirroring the PyTorch forward (eval mode: dropout = identity).
    (w_emb, b_emb, w_a1, b_a1, w_a2, b_a2,
     w_after, b_after, w_cls, b_cls) = params

    def one_bag(x):
        h = jnp.maximum(x @ w_emb + b_emb, 0.0)            # features_to_return
        a = jnp.tanh(h @ w_a1 + b_a1) @ w_a2 + b_a2        # (N, 1)
        a = jax.nn.softmax(a.T, axis=1)                    # (1, N)
        m = a @ h                                          # (1, E)
        m = jnp.maximum(m @ w_after + b_after, 0.0)
        return (m @ w_cls + b_cls).reshape(-1)             # (C,)

    return jax.vmap(one_bag)(feats)


def init_params(key):
    ks = jax.random.split(key, 10)
    w_emb = 0.1 * jax.random.normal(ks[0], (FC_INPUT, E_DIM), jnp.float32)
    b_emb = 0.1 * jax.random.normal(ks[1], (1, E_DIM), jnp.float32)
    w_a1 = 0.1 * jax.random.normal(ks[2], (E_DIM, D_DIM), jnp.float32)
    b_a1 = 0.1 * jax.random.normal(ks[3], (1, D_DIM), jnp.float32)
    w_a2 = 0.1 * jax.random.normal(ks[4], (D_DIM, 1), jnp.float32)
    b_a2 = 0.1 * jax.random.normal(ks[5], (1, 1), jnp.float32)
    w_after = 0.1 * jax.random.normal(ks[6], (E_DIM, E_DIM), jnp.float32)
    b_after = 0.1 * jax.random.normal(ks[7], (1, E_DIM), jnp.float32)
    w_cls = 0.1 * jax.random.normal(ks[8], (E_DIM, N_CLASSES), jnp.float32)
    b_cls = 0.1 * jax.random.normal(ks[9], (1, N_CLASSES), jnp.float32)
    return (w_emb, b_emb, w_a1, b_a1, w_a2, b_a2, w_after, b_after, w_cls, b_cls)


if __name__ == "__main__":
    key = jax.random.PRNGKey(0)
    kp, kf = jax.random.split(key, 2)
    params = init_params(kp)
    feats = jax.random.normal(kf, (N_BAGS, N_INST, FC_INPUT), jnp.float32)

    out = attention_mil_forward(feats, params)
    out = jax.block_until_ready(out)

    ref = reference_forward(feats, params)
    assert out.shape == (N_BAGS, N_CLASSES), out.shape
    assert jnp.allclose(out, ref, atol=1e-4, rtol=1e-4), (out, ref)

    print("KERNEL_OK")
</pallas_src>

<mosaic_0001>
module attributes {stable_mosaic.version = 11 : i64} {
  func.func @attention_mil_kernel(%arg0: i32, %arg1: memref<2x8x32xf32, #tpu.memory_space<vmem>>, %arg2: memref<32x128xf32, #tpu.memory_space<vmem>>, %arg3: memref<1x128xf32, #tpu.memory_space<vmem>>, %arg4: memref<128x64xf32, #tpu.memory_space<vmem>>, %arg5: memref<1x64xf32, #tpu.memory_space<vmem>>, %arg6: memref<64x1xf32, #tpu.memory_space<vmem>>, %arg7: memref<1x1xf32, #tpu.memory_space<vmem>>, %arg8: memref<128x128xf32, #tpu.memory_space<vmem>>, %arg9: memref<1x128xf32, #tpu.memory_space<vmem>>, %arg10: memref<128x4xf32, #tpu.memory_space<vmem>>, %arg11: memref<1x4xf32, #tpu.memory_space<vmem>>, %arg12: memref<2x4xf32, #tpu.memory_space<vmem>>) attributes {dimension_semantics = [#tpu.dimension_semantics<parallel>], iteration_bounds = array<i64: 1>, scalar_prefetch = 0 : i64, scratch_operands = 0 : i64, tpu.core_type = #tpu.core_type<tc>, window_params = [{transform_indices = @transform_0, window_bounds = array<i64: 2, 8, 32>}, {pipeline_mode = #tpu.pipeline_mode<synchronous>, transform_indices = @transform_1, window_bounds = array<i64: 32, 128>}, {pipeline_mode = #tpu.pipeline_mode<synchronous>, transform_indices = @transform_2, window_bounds = array<i64: 1, 128>}, {pipeline_mode = #tpu.pipeline_mode<synchronous>, transform_indices = @transform_3, window_bounds = array<i64: 128, 64>}, {pipeline_mode = #tpu.pipeline_mode<synchronous>, transform_indices = @transform_4, window_bounds = array<i64: 1, 64>}, {pipeline_mode = #tpu.pipeline_mode<synchronous>, transform_indices = @transform_5, window_bounds = array<i64: 64, 1>}, {pipeline_mode = #tpu.pipeline_mode<synchronous>, transform_indices = @transform_6, window_bounds = array<i64: 1, 1>}, {pipeline_mode = #tpu.pipeline_mode<synchronous>, transform_indices = @transform_7, window_bounds = array<i64: 128, 128>}, {pipeline_mode = #tpu.pipeline_mode<synchronous>, transform_indices = @transform_8, window_bounds = array<i64: 1, 128>}, {pipeline_mode = #tpu.pipeline_mode<synchronous>, transform_indices = @transform_9, window_bounds = array<i64: 128, 4>}, {pipeline_mode = #tpu.pipeline_mode<synchronous>, transform_indices = @transform_10, window_bounds = array<i64: 1, 4>}, {transform_indices = @transform_11, window_bounds = array<i64: 2, 4>}]} {
    %c0 = arith.constant 0 : index
    %c0_0 = arith.constant 0 : index
    %c0_1 = arith.constant 0 : index
    %0 = vector.load %arg1[%c0, %c0_0, %c0_1] : memref<2x8x32xf32, #tpu.memory_space<vmem>>, vector<2x8x32xf32>
    %1 = vector.shape_cast %0 : vector<2x8x32xf32> to vector<16x32xf32>
    %c0_2 = arith.constant 0 : index
    %c0_3 = arith.constant 0 : index
    %2 = vector.load %arg2[%c0_2, %c0_3] : memref<32x128xf32, #tpu.memory_space<vmem>>, vector<32x128xf32>
    %cst = arith.constant dense<0.000000e+00> : vector<16x128xf32>
    %3 = tpu.matmul %1, %2, %cst {dimension_numbers = #tpu.dot_dimension_numbers<[1], [0], [0], [1], [0, 0, 1, 1], [], []>} : vector<16x32xf32>, vector<32x128xf32>, vector<16x128xf32> -> vector<16x128xf32>
    %c0_4 = arith.constant 0 : index
    %c0_5 = arith.constant 0 : index
    %4 = vector.load %arg3[%c0_4, %c0_5] : memref<1x128xf32, #tpu.memory_space<vmem>>, vector<1x128xf32>
    %5 = vector.broadcast %4 : vector<1x128xf32> to vector<16x128xf32>
    %6 = arith.addf %3, %5 : vector<16x128xf32>
    %cst_6 = arith.constant 0.000000e+00 : f32
    %7 = vector.broadcast %cst_6 : f32 to vector<16x128xf32>
    %8 = arith.maximumf %6, %7 : vector<16x128xf32>
    %c0_7 = arith.constant 0 : index
    %c0_8 = arith.constant 0 : index
    %9 = vector.load %arg4[%c0_7, %c0_8] : memref<128x64xf32, #tpu.memory_space<vmem>>, vector<128x64xf32>
    %cst_9 = arith.constant dense<0.000000e+00> : vector<16x64xf32>
    %10 = tpu.matmul %8, %9, %cst_9 {dimension_numbers = #tpu.dot_dimension_numbers<[1], [0], [0], [1], [0, 0, 1, 1], [], []>} : vector<16x128xf32>, vector<128x64xf32>, vector<16x64xf32> -> vector<16x64xf32>
    %c0_10 = arith.constant 0 : index
    %c0_11 = arith.constant 0 : index
    %11 = vector.load %arg5[%c0_10, %c0_11] : memref<1x64xf32, #tpu.memory_space<vmem>>, vector<1x64xf32>
    %12 = vector.broadcast %11 : vector<1x64xf32> to vector<16x64xf32>
    %13 = arith.addf %10, %12 : vector<16x64xf32>
    %14 = math.tanh %13 : vector<16x64xf32>
    %c0_12 = arith.constant 0 : index
    %c0_13 = arith.constant 0 : index
    %15 = vector.load %arg6[%c0_12, %c0_13] : memref<64x1xf32, #tpu.memory_space<vmem>>, vector<64x1xf32>
    %cst_14 = arith.constant dense<0.000000e+00> : vector<16x1xf32>
    %16 = tpu.matmul %14, %15, %cst_14 {dimension_numbers = #tpu.dot_dimension_numbers<[1], [0], [0], [1], [0, 0, 1, 1], [], []>} : vector<16x64xf32>, vector<64x1xf32>, vector<16x1xf32> -> vector<16x1xf32>
    %c0_15 = arith.constant 0 : index
    %c0_16 = arith.constant 0 : index
    %17 = vector.load %arg7[%c0_15, %c0_16] : memref<1x1xf32, #tpu.memory_space<vmem>>, vector<1x1xf32>
    %18 = vector.broadcast %17 : vector<1x1xf32> to vector<16x1xf32>
    %19 = arith.addf %16, %18 : vector<16x1xf32>
    %20 = vector.shape_cast %19 : vector<16x1xf32> to vector<2x8x1xf32>
    %cst_17 = arith.constant dense<0xFF800000> : vector<2x1xf32>
    %21 = vector.multi_reduction <maximumf>, %20, %cst_17 [1] : vector<2x8x1xf32> to vector<2x1xf32>
    %22 = vector.shape_cast %21 : vector<2x1xf32> to vector<2x1x1xf32>
    %23 = vector.broadcast %22 : vector<2x1x1xf32> to vector<2x8x1xf32>
    %24 = arith.subf %20, %23 : vector<2x8x1xf32>
    %25 = math.exp %24 : vector<2x8x1xf32>
    %cst_18 = arith.constant dense<0.000000e+00> : vector<2x1xf32>
    %26 = vector.multi_reduction <add>, %25, %cst_18 [1] : vector<2x8x1xf32> to vector<2x1xf32>
    %27 = vector.shape_cast %26 : vector<2x1xf32> to vector<2x1x1xf32>
    %28 = tpu.reciprocal %27 : vector<2x1x1xf32> -> vector<2x1x1xf32>
    %29 = vector.broadcast %28 : vector<2x1x1xf32> to vector<2x8x1xf32>
    %30 = arith.mulf %25, %29 : vector<2x8x1xf32>
    %31 = vector.shape_cast %8 : vector<16x128xf32> to vector<2x8x128xf32>
    %32 = vector.broadcast %30 : vector<2x8x1xf32> to vector<2x8x128xf32>
    %33 = arith.mulf %32, %31 : vector<2x8x128xf32>
    %cst_19 = arith.constant dense<0.000000e+00> : vector<2x128xf32>
    %34 = vector.multi_reduction <add>, %33, %cst_19 [1] : vector<2x8x128xf32> to vector<2x128xf32>
    %c0_20 = arith.constant 0 : index
    %c0_21 = arith.constant 0 : index
    %35 = vector.load %arg8[%c0_20, %c0_21] : memref<128x128xf32, #tpu.memory_space<vmem>>, vector<128x128xf32>
    %cst_22 = arith.constant dense<0.000000e+00> : vector<2x128xf32>
    %36 = tpu.matmul %34, %35, %cst_22 {dimension_numbers = #tpu.dot_dimension_numbers<[1], [0], [0], [1], [0, 0, 1, 1], [], []>} : vector<2x128xf32>, vector<128x128xf32>, vector<2x128xf32> -> vector<2x128xf32>
    %c0_23 = arith.constant 0 : index
    %c0_24 = arith.constant 0 : index
    %37 = vector.load %arg9[%c0_23, %c0_24] : memref<1x128xf32, #tpu.memory_space<vmem>>, vector<1x128xf32>
    %38 = vector.broadcast %37 : vector<1x128xf32> to vector<2x128xf32>
    %39 = arith.addf %36, %38 : vector<2x128xf32>
    %cst_25 = arith.constant 0.000000e+00 : f32
    %40 = vector.broadcast %cst_25 : f32 to vector<2x128xf32>
    %41 = arith.maximumf %39, %40 : vector<2x128xf32>
    %c0_26 = arith.constant 0 : index
    %c0_27 = arith.constant 0 : index
    %42 = vector.load %arg10[%c0_26, %c0_27] : memref<128x4xf32, #tpu.memory_space<vmem>>, vector<128x4xf32>
    %cst_28 = arith.constant dense<0.000000e+00> : vector<2x4xf32>
    %43 = tpu.matmul %41, %42, %cst_28 {dimension_numbers = #tpu.dot_dimension_numbers<[1], [0], [0], [1], [0, 0, 1, 1], [], []>} : vector<2x128xf32>, vector<128x4xf32>, vector<2x4xf32> -> vector<2x4xf32>
    %c0_29 = arith.constant 0 : index
    %c0_30 = arith.constant 0 : index
    %44 = vector.load %arg11[%c0_29, %c0_30] : memref<1x4xf32, #tpu.memory_space<vmem>>, vector<1x4xf32>
    %45 = vector.broadcast %44 : vector<1x4xf32> to vector<2x4xf32>
    %46 = arith.addf %43, %45 : vector<2x4xf32>
    %c0_31 = arith.constant 0 : index
    %c0_32 = arith.constant 0 : index
    %47 = vector.load %arg12[%c0_31, %c0_32] : memref<2x4xf32, #tpu.memory_space<vmem>>, vector<2x4xf32>
    tpu.vector_store %arg12[%c0_31, %c0_32], %46 {strides = array<i32>} : memref<2x4xf32, #tpu.memory_space<vmem>>, vector<2x4xf32>,
    return
  }
  func.func @transform_0(%arg0: i32) -> (i32, i32, i32) {
    %c0_i32 = arith.constant 0 : i32
    %c0_i32_0 = arith.constant 0 : i32
    %c0_i32_1 = arith.constant 0 : i32
    return %arg0, %c0_i32, %c0_i32_0 : i32, i32, i32
  }
  func.func @transform_1(%arg0: i32) -> (i32, i32) {
    %c0_i32 = arith.constant 0 : i32
    %c0_i32_0 = arith.constant 0 : i32
    %c0_i32_1 = arith.constant 0 : i32
    return %c0_i32, %c0_i32_0 : i32, i32
  }
  func.func @transform_2(%arg0: i32) -> (i32, i32) {
    %c0_i32 = arith.constant 0 : i32
    %c0_i32_0 = arith.constant 0 : i32
    %c0_i32_1 = arith.constant 0 : i32
    return %c0_i32, %c0_i32_0 : i32, i32
  }
  func.func @transform_3(%arg0: i32) -> (i32, i32) {
    %c0_i32 = arith.constant 0 : i32
    %c0_i32_0 = arith.constant 0 : i32
    %c0_i32_1 = arith.constant 0 : i32
    return %c0_i32, %c0_i32_0 : i32, i32
  }
  func.func @transform_4(%arg0: i32) -> (i32, i32) {
    %c0_i32 = arith.constant 0 : i32
    %c0_i32_0 = arith.constant 0 : i32
    %c0_i32_1 = arith.constant 0 : i32
    return %c0_i32, %c0_i32_0 : i32, i32
  }
  func.func @transform_5(%arg0: i32) -> (i32, i32) {
    %c0_i32 = arith.constant 0 : i32
    %c0_i32_0 = arith.constant 0 : i32
    %c0_i32_1 = arith.constant 0 : i32
    return %c0_i32, %c0_i32_0 : i32, i32
  }
  func.func @transform_6(%arg0: i32) -> (i32, i32) {
    %c0_i32 = arith.constant 0 : i32
    %c0_i32_0 = arith.constant 0 : i32
    %c0_i32_1 = arith.constant 0 : i32
    return %c0_i32, %c0_i32_0 : i32, i32
  }
  func.func @transform_7(%arg0: i32) -> (i32, i32) {
    %c0_i32 = arith.constant 0 : i32
    %c0_i32_0 = arith.constant 0 : i32
    %c0_i32_1 = arith.constant 0 : i32
    return %c0_i32, %c0_i32_0 : i32, i32
  }
  func.func @transform_8(%arg0: i32) -> (i32, i32) {
    %c0_i32 = arith.constant 0 : i32
    %c0_i32_0 = arith.constant 0 : i32
    %c0_i32_1 = arith.constant 0 : i32
    return %c0_i32, %c0_i32_0 : i32, i32
  }
  func.func @transform_9(%arg0: i32) -> (i32, i32) {
    %c0_i32 = arith.constant 0 : i32
    %c0_i32_0 = arith.constant 0 : i32
    %c0_i32_1 = arith.constant 0 : i32
    return %c0_i32, %c0_i32_0 : i32, i32
  }
  func.func @transform_10(%arg0: i32) -> (i32, i32) {
    %c0_i32 = arith.constant 0 : i32
    %c0_i32_0 = arith.constant 0 : i32
    %c0_i32_1 = arith.constant 0 : i32
    return %c0_i32, %c0_i32_0 : i32, i32
  }
  func.func @transform_11(%arg0: i32) -> (i32, i32) {
    %c0_i32 = arith.constant 0 : i32
    %c0_i32_0 = arith.constant 0 : i32
    return %arg0, %c0_i32 : i32, i32
  }
}

</mosaic_0001>

<bundles_post_ra>
// kernel: tpu_custom_call.1
= control target key start
LH: loop header
LB: loop body
LE: loop exit
PB: predicated region body
PF: predicated region fallthrough
CT: control target
= control target key end

     0   :  { %s1179_s0 = inlined_call_operand.vmem [shape: f32[2,8,32], index: 0, kind: input, shape index: {}]   ;;  %s1180_s1 = inlined_call_operand.vmem [shape: f32[32,128], index: 1, kind: input, shape index: {}]   ;;  %s1181_s2 = inlined_call_operand.vmem [shape: f32[1,128], index: 2, kind: input, shape index: {}]   ;;  %s1182_s3 = inlined_call_operand.vmem [shape: f32[128,64], index: 3, kind: input, shape index: {}]   ;;  %s1183_s4 = inlined_call_operand.vmem [shape: f32[1,64], index: 4, kind: input, shape index: {}]   ;;  %s1184_s5 = inlined_call_operand.vmem [shape: f32[64,1], index: 5, kind: input, shape index: {}]   ;;  %s1185_s6 = inlined_call_operand.<no memory space> [shape: f32[1,1], index: 6, kind: input, shape index: {}]   ;;  %s1186_s7 = inlined_call_operand.vmem [shape: f32[128,128], index: 7, kind: input, shape index: {}]   ;;  %s1187_s8 = inlined_call_operand.vmem [shape: f32[1,128], index: 8, kind: input, shape index: {}]   ;;  %s1188_s9 = inlined_call_operand.vmem [shape: f32[128,4], index: 9, kind: input, shape index: {}]   ;;  %s1189_s10 = inlined_call_operand.vmem [shape: f32[1,4], index: 10, kind: input, shape index: {}]   ;;  %s1190_s11 = inlined_call_operand.hbm [shape: f32[2,4], index: 11, kind: output, shape index: {}]  }
   0x1   :  { %v16_v0 = vstv %s1185_s6 }
   0x2   :  { %17 = vst [vmem:[#allocation2] sm:$0x1] %v16_v0 }
   0x3   :  { %v46_v1 = vld [vmem:[%s1180_s1 + $0x18] sm:$0xff]  ;;  %v45_v2 = vld [vmem:[%s1180_s1 + $0x10] sm:$0xff]  ;;  %vm54_vm0 = vcmask 261120   ;;  %v41_v3 = vld [vmem:[%s1179_s0] sm:$0xff] }
   0x4   :  { %683 = vmatprep.subr.mxu0 %v46_v1  ;;  %v44_v4 = vld [vmem:[%s1180_s1 + $0x8] sm:$0xff]  ;;  %691 = vmatprep.mubr.msk.f32.mxu0 %vm54_vm0, %v41_v3  ;;  %v153_v5 = vld [vmem:[%s1182_s3 + $0x78] sm:$0xff]  ;;  %v152_v6 = vld [vmem:[%s1182_s3 + $0x70] sm:$0xff] }
   0x5   :  { %684 = vmatpush3.msra.mxu0 %v46_v1  ;;  %694 = vmatprep.subr.mxu1 %v153_v5  ;;  %v43_v7 = vld [vmem:[%s1180_s1] sm:$0xff]  ;;  %v151_v8 = vld [vmem:[%s1182_s3 + $0x68] sm:$0xff] }
   0x6   :  { %685 = vmatprep.subr.mxu0 %v45_v2  ;;  %695 = vmatpush3.msra.mxu1 %v153_v5  ;;  %v42_v9 = vld [vmem:[%s1179_s0 + $0x8] sm:$0xff]  ;;  %v150_v10 = vld [vmem:[%s1182_s3 + $0x60] sm:$0xff] }
   0x7   :  { %686 = vmatpush3.msra.mxu0 %v45_v2  ;;  %696 = vmatprep.subr.mxu1 %v152_v6 }
   0x8   :  { %687 = vmatprep.subr.mxu0 %v44_v4  ;;  %697 = vmatpush3.msra.mxu1 %v152_v6 }
   0x9   :  { %688 = vmatpush3.msra.mxu0 %v44_v4 }
   0xa   :  { %18 = vsyncpa [#allocation4], 0  ;;  %689 = vmatprep.subr.mxu0 %v43_v7  ;;  %698 = vmatprep.subr.mxu1 %v151_v8  ;;  %v149_v11 = vld [vmem:[%s1182_s3 + $0x58] sm:$0xff]  ;;  %v148_v12 = vld [vmem:[%s1182_s3 + $0x50] sm:$0xff]  ;;  %vm253_vm1 = vcmask 523264   ;;  %v857_v45 = vmov 0  }
   0xb   :  { %690 = vmatpush3.msra.mxu0 %v43_v7  ;;  %699 = vmatpush3.msra.mxu1 %v151_v8  ;;  %v147_v13 = vld [vmem:[%s1182_s3 + $0x48] sm:$0xff]  ;;  %v146_v14 = vld [vmem:[%s1182_s3 + $0x40] sm:$0xff]  ;;  %v145_v15 = vld [vmem:[%s1182_s3 + $0x38] sm:$0xff]  ;;  %v858_v47 = vmov 0.0   ;;  %vm335_vm2 = vcmask 7168   ;;  %vm859_vm3 = vmmov 0  }
   0xc   :  { %692 = vmatmul.mubr.msk.f32.vlgmr.msra.gmra.mxu0 %vm54_vm0, %v42_v9  ;;  %700 = vmatprep.subr.mxu1 %v150_v10  ;;  %v144_v16 = vld [vmem:[%s1182_s3 + $0x30] sm:$0xff]  ;;  %v143_v17 = vld [vmem:[%s1182_s3 + $0x28] sm:$0xff]  ;;  %v142_v18 = vld [vmem:[%s1182_s3 + $0x20] sm:$0xff]  ;;  %vm423_vm4 = vcmask 1041409   ;;  %s860_s25 = smov [#allocation3]   ;;  %vm590_vm5 = vcmask 25600  }
   0xd   :  { %701 = vmatpush3.msra.mxu1 %v150_v10  ;;  %v141_v19 = vld [vmem:[%s1182_s3 + $0x18] sm:$0xff]  ;;  %v140_v20 = vld [vmem:[%s1182_s3 + $0x10] sm:$0xff]  ;;  %v139_v21 = vld [vmem:[%s1182_s3 + $0x8] sm:$0xff]  ;;  %822 = vset.pattern.permute.xlu0 %v857_v45  ;;  %s598_s26 = sshll.u32 %s860_s25, 4  ;;  %s599_s26 = int_to_ptr.vmem [resolvable:$true] %s598_s26 }
   0xe   :  { %702 = vmatprep.subr.mxu1 %v149_v11  ;;  %v138_v22 = vld [vmem:[%s1182_s3] sm:$0xff]  ;;  %v245_v30 = vld [vmem:[%s1184_s5 + $0x38] sm:$0xff]  ;;  %v244_v31 = vld [vmem:[%s1184_s5 + $0x30] sm:$0xff]  ;;  %p840_p1 = scmp.lt.s32.totalorder %s599_s26, %s599_s26 }
   0xf   :  { %703 = vmatpush3.msra.mxu1 %v149_v11  ;;  %v606_v23 = vld [vmem:[%s1181_s2] ss:$0 sm:$0xff]  ;;  %729 = vmatprep.subr.mxu0 %v245_v30  ;;  %v243_v32 = vld [vmem:[%s1184_s5 + $0x28] sm:$0xff]  ;;  %v241_v34 = vld [vmem:[%s1184_s5 + $0x18] sm:$0xff] }
  0x10   :  { %704 = vmatprep.subr.mxu1 %v148_v12  ;;  %730 = vmatpush3.msra.mxu0 %v245_v30  ;;  %v242_v33 = vld [vmem:[%s1184_s5 + $0x20] sm:$0xff]  ;;  %v240_v35 = vld [vmem:[%s1184_s5 + $0x10] sm:$0xff]  ;;  %v239_v36 = vld [vmem:[%s1184_s5 + $0x8] sm:$0xff] }
  0x11   :  { %705 = vmatpush3.msra.mxu1 %v148_v12  ;;  %731 = vmatprep.subr.mxu0 %v244_v31  ;;  %v238_v37 = vld [vmem:[%s1184_s5] sm:$0xff]  ;;  %v413_v46 = vld [vmem:[%s1186_s7 + $0x78] sm:$0xff]  ;;  %v412_v48 = vld [vmem:[%s1186_s7 + $0x70] sm:$0xff] }
  0x12   :  { %706 = vmatprep.subr.mxu1 %v147_v13  ;;  %732 = vmatpush3.msra.mxu0 %v244_v31  ;;  %v609_v38 = vld [vmem:[%s1183_s4] ss:$0 sm:$0xff]  ;;  %v411_v49 = vld [vmem:[%s1186_s7 + $0x68] sm:$0xff]  ;;  %v409_v51 = vld [vmem:[%s1186_s7 + $0x58] sm:$0xff] }
  0x13   :  { %707 = vmatpush3.msra.mxu1 %v147_v13  ;;  %733 = vmatprep.subr.mxu0 %v243_v32  ;;  %v410_v50 = vld [vmem:[%s1186_s7 + $0x60] sm:$0xff]  ;;  %v408_v52 = vld [vmem:[%s1186_s7 + $0x50] sm:$0xff] }
  0x14   :  { %708 = vmatprep.subr.mxu1 %v146_v14  ;;  %734 = vmatpush3.msra.mxu0 %v243_v32  ;;  %v610_v53 = vld [vmem:[#allocation2] ss:$0 sm:$0xff]  ;;  %v407_v32 = vld [vmem:[%s1186_s7 + $0x48] sm:$0xff] }
  0x15   :  { %709 = vmatpush3.msra.mxu1 %v146_v14  ;;  %735 = vmatprep.subr.mxu0 %v242_v33  ;;  %v398_v45 = vld [vmem:[%s1186_s7] sm:$0xff] }
  0x16   :  { %710 = vmatprep.subr.mxu1 %v145_v15  ;;  %736 = vmatpush3.msra.mxu0 %v242_v33 }
  0x17   :  { %711 = vmatpush3.msra.mxu1 %v145_v15  ;;  %737 = vmatprep.subr.mxu0 %v241_v34 }
  0x18   :  { %712 = vmatprep.subr.mxu1 %v144_v16  ;;  %738 = vmatpush3.msra.mxu0 %v241_v34  ;;  %v406_v34 = vld [vmem:[%s1186_s7 + $0x40] sm:$0xff] }
  0x19   :  { %713 = vmatpush3.msra.mxu1 %v144_v16  ;;  %739 = vmatprep.subr.mxu0 %v240_v35 }
  0x1a   :  { %714 = vmatprep.subr.mxu1 %v143_v17  ;;  %740 = vmatpush3.msra.mxu0 %v240_v35 }
  0x1b   :  { %715 = vmatpush3.msra.mxu1 %v143_v17  ;;  %741 = vmatprep.subr.mxu0 %v239_v36 }
  0x1c   :  { %716 = vmatprep.subr.mxu1 %v142_v18  ;;  %742 = vmatpush3.msra.mxu0 %v239_v36 }
  0x1d   :  { %717 = vmatpush3.msra.mxu1 %v142_v18  ;;  %743 = vmatprep.subr.mxu0 %v238_v37 }
  0x1e   :  { %718 = vmatprep.subr.mxu1 %v141_v19  ;;  %744 = vmatpush3.msra.mxu0 %v238_v37  ;;  %v405_v37 = vld [vmem:[%s1186_s7 + $0x38] sm:$0xff] }
  0x1f   :  { %719 = vmatpush3.msra.mxu1 %v141_v19  ;;  %748 = vmatprep.subr.mxu0 %v858_v47 }
  0x20   :  { %720 = vmatprep.subr.mxu1 %v140_v20 }
  0x21   :  { %721 = vmatpush3.msra.mxu1 %v140_v20 }
  0x22   :  { %722 = vmatprep.subr.mxu1 %v139_v21 }
  0x23   :  { %723 = vmatpush3.msra.mxu1 %v139_v21 }
  0x24   :  { %724 = vmatprep.subr.mxu1 %v138_v22 }
  0x25   :  { %725 = vmatpush3.msra.mxu1 %v138_v22 }
  0x26   :  { %783 = vmatprep.subr.mxu1 %v858_v47 }
  0xcc   :  { %v693_v24 = vpop.f32.mrf.mxu0 }
  0xcd   :  { %v995_v25 = vadd.f32 %v693_v24, %v606_v23 }
  0xce   :  { %v127_v26 = vpop.f32.mrf.mxu0 }
  0xcf   :  { %v997_v27 = vadd.f32 %v606_v23, %v127_v26  ;;  %v137_v29 = vmax.f32 %v995_v25, 0.0  ;;  %v498_v25 = vld [vmem:[%s1188_s9 + $0x8] sm:$0xff] }
  0xd1   :  { %v136_v28 = vmax.f32 %v997_v27, 0.0  ;;  %v499_v27 = vld [vmem:[%s1188_s9 + $0x10] sm:$0xff] }
  0xd3   :  { %726 = vmatprep.mubr.f32.mxu1 %v136_v28 }
  0xd4   :  { %727 = vmatmul.mubr.f32.vlgmr.msra.gmra.mxu1 %v137_v29 }
  0xd5   :  { %815 = vmatprep.mubr.msk.f32.mxu1 %vm859_vm3, %v858_v47 }
 0x194   :  { %v728_v39 = vpop.f32.mrf.mxu1 }
 0x195   :  { %v233_v40 = vadd.f32 %v728_v39, %v609_v38 }
 0x196   :  { %v227_v41 = vpop.f32.mrf.mxu1 }
 0x197   :  { %v228_v42 = vadd.f32 %v609_v38, %v227_v41  ;;  %v404_v38 = vld [vmem:[%s1186_s7 + $0x30] sm:$0xff]  ;;  %v402_v41 = vld [vmem:[%s1186_s7 + $0x20] sm:$0xff] }
 0x199   :  { %823 = vtanh.f32 %v228_v42  ;;  %v401_v42 = vld [vmem:[%s1186_s7 + $0x18] sm:$0xff] }
 0x19a   :  { %825 = vtanh.f32 %v233_v40  ;;  %v403_v40 = vld [vmem:[%s1186_s7 + $0x28] sm:$0xff] }
 0x1a6   :  { %v824_v43 = vpop.eup %823 }
 0x1a7   :  { %v826_v44 = vpop.eup %825  ;;  %745 = vmatprep.mubr.msk.f32.mxu0 %vm253_vm1, %v824_v43  ;;  %v400_v43 = vld [vmem:[%s1186_s7 + $0x10] sm:$0xff] }
 0x1a8   :  { %746 = vmatmul.mubr.msk.f32.vlgmr.msra.gmra.mxu0 %vm253_vm1, %v826_v44  ;;  %v399_v44 = vld [vmem:[%s1186_s7 + $0x8] sm:$0xff] }
 0x1a9   :  { %749 = vmatpush3.msra.mxu0 %v413_v46  ;;  %780 = vmatprep.mubr.msk.f32.mxu0 %vm859_vm3, %v858_v47  ;;  %v512_v46 = vld [vmem:[%s1188_s9 + $0x78] sm:$0xff] }
 0x1aa   :  { %750 = vmatprep.subr.mxu0 %v858_v47  ;;  %784 = vmatpush3.msra.mxu1 %v512_v46 }
 0x1ab   :  { %751 = vmatpush3.msra.mxu0 %v412_v48  ;;  %v511_v48 = vld [vmem:[%s1188_s9 + $0x70] sm:$0xff]  ;;  %785 = vmatprep.subr.mxu1 %v858_v47 }
 0x1ac   :  { %752 = vmatprep.subr.mxu0 %v858_v47  ;;  %786 = vmatpush3.msra.mxu1 %v511_v48 }
 0x1ad   :  { %753 = vmatpush3.msra.mxu0 %v411_v49  ;;  %v510_v49 = vld [vmem:[%s1188_s9 + $0x68] sm:$0xff]  ;;  %787 = vmatprep.subr.mxu1 %v858_v47 }
 0x1ae   :  { %754 = vmatprep.subr.mxu0 %v858_v47  ;;  %788 = vmatpush3.msra.mxu1 %v510_v49 }
 0x1af   :  { %755 = vmatpush3.msra.mxu0 %v410_v50  ;;  %v509_v50 = vld [vmem:[%s1188_s9 + $0x60] sm:$0xff]  ;;  %789 = vmatprep.subr.mxu1 %v858_v47 }
 0x1b0   :  { %756 = vmatprep.subr.mxu0 %v858_v47  ;;  %790 = vmatpush3.msra.mxu1 %v509_v50 }
 0x1b1   :  { %757 = vmatpush3.msra.mxu0 %v409_v51  ;;  %v508_v51 = vld [vmem:[%s1188_s9 + $0x58] sm:$0xff]  ;;  %791 = vmatprep.subr.mxu1 %v858_v47 }
 0x1b2   :  { %758 = vmatprep.subr.mxu0 %v858_v47  ;;  %792 = vmatpush3.msra.mxu1 %v508_v51 }
 0x1b3   :  { %759 = vmatpush3.msra.mxu0 %v408_v52  ;;  %v507_v52 = vld [vmem:[%s1188_s9 + $0x50] sm:$0xff]  ;;  %793 = vmatprep.subr.mxu1 %v858_v47 }
 0x1b4   :  { %760 = vmatprep.subr.mxu0 %v858_v47  ;;  %794 = vmatpush3.msra.mxu1 %v507_v52 }
 0x1b5   :  { %761 = vmatpush3.msra.mxu0 %v407_v32  ;;  %795 = vmatprep.subr.mxu1 %v858_v47 }
 0x1b6   :  { %762 = vmatprep.subr.mxu0 %v858_v47 }
 0x1b7   :  { %763 = vmatpush3.msra.mxu0 %v406_v34 }
 0x1b8   :  { %764 = vmatprep.subr.mxu0 %v858_v47 }
 0x1b9   :  { %765 = vmatpush3.msra.mxu0 %v405_v37 }
 0x1ba   :  { %766 = vmatprep.subr.mxu0 %v858_v47 }
 0x1bb   :  { %767 = vmatpush3.msra.mxu0 %v404_v38 }
 0x1bc   :  { %768 = vmatprep.subr.mxu0 %v858_v47 }
 0x1bd   :  { %769 = vmatpush3.msra.mxu0 %v403_v40 }
 0x1be   :  { %770 = vmatprep.subr.mxu0 %v858_v47 }
 0x1bf   :  { %771 = vmatpush3.msra.mxu0 %v402_v41 }
 0x1c0   :  { %772 = vmatprep.subr.mxu0 %v858_v47 }
 0x1c1   :  { %773 = vmatpush3.msra.mxu0 %v401_v42 }
 0x1c2   :  { %774 = vmatprep.subr.mxu0 %v858_v47 }
 0x1c3   :  { %775 = vmatpush3.msra.mxu0 %v400_v43 }
 0x1c4   :  { %776 = vmatprep.subr.mxu0 %v858_v47 }
 0x1c5   :  { %777 = vmatpush3.msra.mxu0 %v399_v44 }
 0x1c6   :  { %778 = vmatprep.subr.mxu0 %v858_v47 }
 0x1c7   :  { %779 = vmatpush3.msra.mxu0 %v398_v45 }
 0x268   :  { %v747_v54 = vpop.f32.mrf.mxu0 }
 0x269   :  { %v332_v55 = vadd.f32 %v747_v54, %v610_v53  ;;  %v505_v54 = vld [vmem:[%s1188_s9 + $0x40] sm:$0xff] }
 0x26a   :  { %v326_v56 = vpop.f32.mrf.mxu0 }
 0x26b   :  { %v343_v57 = vsel %vm335_vm2, %v332_v55, -inf  ;;  %v327_v58 = vadd.f32 %v610_v53, %v326_v56  ;;  %v506_v53 = vld [vmem:[%s1188_s9 + $0x48] sm:$0xff]  ;;  %v503_v56 = vld [vmem:[%s1188_s9 + $0x30] sm:$0xff] }
 0x26c   :  { %v344_v59 = vrot.slane %v343_v57, 4  ;;  %796 = vmatpush3.msra.mxu1 %v506_v53 }
 0x26d   :  { %v336_v60 = vsel %vm335_vm2, %v327_v58, -inf  ;;  %797 = vmatprep.subr.mxu1 %v858_v47 }
 0x26e   :  { %v345_v61 = vmax.f32 %v343_v57, %v344_v59  ;;  %v337_v62 = vrot.slane %v336_v60, 4  ;;  %798 = vmatpush3.msra.mxu1 %v505_v54  ;;  %v502_v57 = vld [vmem:[%s1188_s9 + $0x28] sm:$0xff]  ;;  %v500_v59 = vld [vmem:[%s1188_s9 + $0x18] sm:$0xff] }
 0x26f   :  { %799 = vmatprep.subr.mxu1 %v858_v47 }
 0x270   :  { %v346_v63 = vrot.slane %v345_v61, 2  ;;  %v338_v0 = vmax.f32 %v336_v60, %v337_v62 }
 0x272   :  { %v347_v1 = vmax.f32 %v345_v61, %v346_v63  ;;  %v339_v2 = vrot.slane %v338_v0, 2 }
 0x274   :  { %v348_v3 = vrot.slane %v347_v1, 1  ;;  %v340_v4 = vmax.f32 %v338_v0, %v339_v2 }
 0x276   :  { %v349_v5 = vmax.f32 %v347_v1, %v348_v3  ;;  %v341_v6 = vrot.slane %v340_v4, 1 }
 0x278   :  { %v351_v7 = vsub.f32 %v332_v55, %v349_v5  ;;  %v342_v8 = vmax.f32 %v340_v4, %v341_v6  ;;  %v504_v55 = vld [vmem:[%s1188_s9 + $0x38] sm:$0xff] }
 0x279   :  { %800 = vmatpush3.msra.mxu1 %v504_v55 }
 0x27a   :  { %v354_v9 = vmul.f32 1.442695, %v351_v7  ;;  %v350_v10 = vsub.f32 %v327_v58, %v342_v8  ;;  %801 = vmatprep.subr.mxu1 %v858_v47  ;;  %v501_v58 = vld [vmem:[%s1188_s9 + $0x20] sm:$0xff] }
 0x27b   :  { %802 = vmatpush3.msra.mxu1 %v503_v56 }
 0x27c   :  { %827 = vpow2.f32 %v354_v9  ;;  %v352_v11 = vmul.f32 1.442695, %v350_v10  ;;  %803 = vmatprep.subr.mxu1 %v858_v47 }
 0x27d   :  { %804 = vmatpush3.msra.mxu1 %v502_v57 }
 0x27e   :  { %829 = vpow2.f32 %v352_v11  ;;  %805 = vmatprep.subr.mxu1 %v858_v47 }
 0x27f   :  { %806 = vmatpush3.msra.mxu1 %v501_v58 }
 0x280   :  { %807 = vmatprep.subr.mxu1 %v858_v47 }
 0x281   :  { %808 = vmatpush3.msra.mxu1 %v500_v59 }
 0x282   :  { %809 = vmatprep.subr.mxu1 %v858_v47 }
 0x283   :  { %810 = vmatpush3.msra.mxu1 %v499_v27 }
 0x284   :  { %811 = vmatprep.subr.mxu1 %v858_v47 }
 0x285   :  { %812 = vmatpush3.msra.mxu1 %v498_v25 }
 0x286   :  { %813 = vmatprep.subr.mxu1 %v858_v47 }
 0x289   :  { %v828_v12 = vpop.eup %827 }
 0x28a   :  { %v363_v13 = vsel %vm335_vm2, %v828_v12, 0.0 }
 0x28b   :  { %v830_v14 = vpop.eup %829  ;;  %v364_v15 = vrot.slane %v363_v13, 4 }
 0x28c   :  { %v356_v16 = vsel %vm335_vm2, %v830_v14, 0.0 }
 0x28d   :  { %v365_v17 = vadd.f32 %v364_v15, %v363_v13  ;;  %v357_v18 = vrot.slane %v356_v16, 4 }
 0x28f   :  { %v366_v19 = vrot.slane %v365_v17, 2  ;;  %v358_v20 = vadd.f32 %v357_v18, %v356_v16 }
 0x291   :  { %v367_v21 = vadd.f32 %v366_v19, %v365_v17  ;;  %v359_v22 = vrot.slane %v358_v20, 2  ;;  %v614_v17 = vld [vmem:[%s1189_s10] ss:$0 sm:$0xff] }
 0x293   :  { %v368_v23 = vrot.slane %v367_v21, 1  ;;  %v360_v24 = vadd.f32 %v359_v22, %v358_v20 }
 0x295   :  { %v361_v26 = vrot.slane %v360_v24, 1  ;;  %v369_v30 = vadd.f32 %v368_v23, %v367_v21 }
 0x297   :  { %v362_v31 = vadd.f32 %v361_v26, %v360_v24 }
 0x299   :  { %831 = vrcp.f32 %v362_v31 }
 0x29a   :  { %833 = vrcp.f32 %v369_v30 }
 0x2a6   :  { %v832_v33 = vpop.eup %831 }
 0x2a7   :  { %v372_v35 = vmul.f32 %v832_v33, %v830_v14  ;;  %v834_v36 = vpop.eup %833 }
 0x2a8   :  { %v373_v39 = vmul.f32 %v834_v36, %v828_v12 }
 0x2a9   :  { %376 = vperm.xlu0 %822, %v372_v35  }
 0x2ad   :  { %381 = vperm.xlu0 %822, %v373_v39  }
 0x324   :  { %v377_v60 = vpop.permute.xlu0 %376 }
 0x325   :  { %v384_v61 = vmul.f32 %v377_v60, %v136_v28  ;;  %v497_v28 = vld [vmem:[%s1188_s9] sm:$0xff]  ;;  %s835_s9 = scalar_lea.vmem %s599_s26, 32 }
 0x326   :  { %814 = vmatpush3.msra.mxu1 %v497_v28  ;;  %p836_p0 = scmp.ne.s32.totalorder %s599_s26, %s835_s9  ;;  %p841_p2 = scmp.lt.s32.totalorder %s835_s9, %s835_s9 }
 0x327   :  { %v386_v62 = vrot.slane %v384_v61, 4 }
 0x328   :  { %v382_v63 = vpop.permute.xlu0 %381  ;;  %p842_p3 = por %p841_p2, %p840_p1 }
 0x329   :  { %v387_v0 = vadd.f32 %v386_v62, %v384_v61  ;;  %v385_v1 = vmul.f32 %v382_v63, %v137_v29  ;;  %v613_v29 = vld [vmem:[%s1187_s8] ss:$0 sm:$0xff] }
 0x32a   :  { %p843_p4 = pnand %p842_p3, %p836_p0 }
 0x32b   :  { %v388_v2 = vrot.slane %v387_v0, 2  ;;  %v392_v3 = vrot.slane %v385_v1, 4 }
 0x32d   :  { %v389_v4 = vadd.f32 %v388_v2, %v387_v0  ;;  %v393_v5 = vadd.f32 %v392_v3, %v385_v1 }
 0x32f   :  { %v394_v6 = vrot.slane %v393_v5, 2  ;;  %v390_v7 = vrot.slane %v389_v4, 1 }
 0x331   :  { %v395_v8 = vadd.f32 %v394_v6, %v393_v5  ;;  %v391_v10 = vadd.f32 %v390_v7, %v389_v4 }
 0x333   :  { %v396_v9 = vrot.slane %v395_v8, 1 }
 0x335   :  { %v397_v11 = vadd.f32 %v396_v9, %v395_v8 }
 0x337   :  { %v424_v12 = vsel %vm423_vm4, %v397_v11, %v391_v10 }
 0x338   :  { %781 = vmatmul.mubr.f32.vlgmr.msra.gmra.mxu0 %v424_v12 }
 0x3f8   :  { %v492_v13 = vpop.f32.mrf.mxu0 }
 0x3f9   :  { %v493_v14 = vadd.f32 %v613_v29, %v492_v13 }
 0x3fa   :  { %v782_v15 = vpop.f32.mrf.mxu0 }
 0x3fb   :  { %v496_v16 = vmax.f32 %v493_v14, 0.0 }
 0x3fd   :  { %816 = vmatmul.mubr.f32.vlgmr.msra.gmra.mxu1 %v496_v16 }
 0x4bd   :  { %v586_v47 = vpop.f32.mrf.mxu1 }
 0x4be   :  { %v587_v18 = vadd.f32 %v614_v17, %v586_v47 }
 0x4bf   :  { %v817_v19 = vpop.f32.mrf.mxu1 }
 0x4c0   :  { %591 = vst.msk [vmem:[#allocation3] sm:$0x3] %vm590_vm5, %v587_v18 }
 0x4c1   :  { %846 = shalt.err (!%p843_p4)
}
 0x4c2   :  { %601 = dma.vmem_to_hbm [thread:$0]  %s599_s26, 32, %s1190_s11, [#allocation4]  }
 0x4c3   :  { %855 = dma.done.wait [#allocation4], 32  }
 0x4c4   :  { %856 = vsyncadd [#allocation4], 4294967264 }
 0x4c5   :  { %605 = vsyncpa [#allocation4], 1 }

</bundles_post_ra>
